<compile_context>
chip_gen: v7x
topology: tpu7x:2x2x1
jax: 0.10.0
libtpu: 0.0.40
codegen_flags: <defaults>
</compile_context>

<pallas_src>
import jax
import jax.numpy as jnp
from jax.experimental import pallas as pl
from jax.experimental.pallas import tpu as pltpu

HIDDEN = 64  # true hidden width of every layer (no lane padding needed)


def _dqn_mlp_kernel(x_ref, w1_ref, wpack_ref, bias_ref, out_ref):
    """Whole MLP hot path fused: 4 MXU matmuls + f32 bias/ReLU on the VPU.

    x_ref:     [bm, 6]        (f32; kept full precision)
    w1_ref:    [6, 64]        (f32; tiny K=6 matmul, negligible MXU cost)
    wpack_ref: [3, 64, 64]    (compute dtype; W2, W3, W4 with W4 zero-padded to 64 cols)
    bias_ref:  [4, 64]        (f32; b4 zero-padded past n_actions)
    out_ref:   [bm, n_actions] (f32; narrow store -> minimal HBM writeback)
    """
    n_act = out_ref.shape[-1]
    cdt = wpack_ref.dtype

    # numerical_fc: Linear(6,64) -> ReLU -> Dropout(0.1) [identity in eval]
    h = jnp.dot(x_ref[...], w1_ref[...], preferred_element_type=jnp.float32)
    h = jnp.maximum(h + bias_ref[0:1, :], 0.0)
    #               Linear(64,64) -> ReLU
    h = jnp.dot(h.astype(cdt), wpack_ref[0], preferred_element_type=jnp.float32)
    h = jnp.maximum(h + bias_ref[1:2, :], 0.0)

    # fc head: Linear(64,64) -> ReLU -> Linear(64, n_actions)
    h = jnp.dot(h.astype(cdt), wpack_ref[1], preferred_element_type=jnp.float32)
    h = jnp.maximum(h + bias_ref[2:3, :], 0.0)
    q = jnp.dot(h.astype(cdt), wpack_ref[2], preferred_element_type=jnp.float32)

    out_ref[...] = (q[:, :n_act] + bias_ref[3:4, :n_act]).astype(out_ref.dtype)


def prepare_params(params, compute_dtype=jnp.bfloat16):
    """One-time parameter preparation (do this at load time, NOT per call).

    Transposes PyTorch-layout weights to [in, out], stacks the three 64x64
    weights into one [3,64,64] tensor (W4 zero-padded to 64 output cols) and all
    biases into one [4,64] tensor. The hidden-layer weights use `compute_dtype`
    (bf16 is the recommended default on v5e, v6e and v7x: the MXU is bf16-native
    on all three; accumulation stays f32). The first layer's weight and the
    biases stay f32: the input features are never quantized, and bias-add/ReLU
    run on the VPU in f32.
    """
    n_actions = params["fc2_w"].shape[0]
    num_in = params["num_fc1_w"].shape[1]
    hidden = params["num_fc1_w"].shape[0]
    assert hidden == HIDDEN and n_actions <= HIDDEN

    def pad_to(a, shape):
        return jnp.pad(a, [(0, s - d) for d, s in zip(a.shape, shape)])

    w1 = params["num_fc1_w"].T.astype(jnp.float32)                      # [6, 64]
    w2 = params["num_fc2_w"].T                                          # [64, 64]
    w3 = params["fc1_w"].T                                              # [64, 64]
    w4 = pad_to(params["fc2_w"].T, (HIDDEN, HIDDEN))                    # [64, 64]
    w_pack = jnp.stack([w2, w3, w4]).astype(compute_dtype)              # [3, 64, 64]

    bias = jnp.stack([
        params["num_fc1_b"],
        params["num_fc2_b"],
        params["fc1_b"],
        pad_to(params["fc2_b"], (HIDDEN,)),
    ]).astype(jnp.float32)                                               # [4, 64]

    return {"w1": w1, "w_pack": w_pack, "bias": bias,
            "n_actions": n_actions, "num_in": num_in}


def dqn_forward(numerical_input, prepared, *, block_batch=2048):
    """Fused DQN forward. `prepared` comes from prepare_params (built once).

    Tile selection:
      * small B (latency / act() path): one resident block, no pipelining.
      * large B (throughput path): >= 4 grid blocks so v7x's two TensorCores
        each get >= 2 (grid axis marked "parallel"), tile capped at
        `block_batch` rows (2048 default keeps double-buffered x/out well under
        v5e's 16 MiB scoped-VMEM default; raise vmem_limit_bytes if you push it).
    """
    B, F = numerical_input.shape
    assert F == prepared["num_in"]
    n_actions = prepared["n_actions"]
    w1, w_pack, bias = prepared["w1"], prepared["w_pack"], prepared["bias"]

    if B <= min(block_batch, 512):
        bm = B                                                   # single block
    else:
        bm = min(block_batch, ((pl.cdiv(B, 4) + 7) // 8) * 8)    # multiple-of-8 tiles
    grid = (pl.cdiv(B, bm),)

    flops = 2 * B * (F * HIDDEN + 2 * HIDDEN * HIDDEN + HIDDEN * n_actions)
    bytes_accessed = (numerical_input.size * numerical_input.dtype.itemsize
                      + w1.size * w1.dtype.itemsize
                      + w_pack.size * w_pack.dtype.itemsize
                      + bias.size * bias.dtype.itemsize
                      + B * n_actions * 4)

    # NOTE(v7x): if a profile shows one TensorCore idle despite multiple blocks,
    # switch dimension_semantics to (pltpu.CORE_PARALLEL,).
    return pl.pallas_call(
        _dqn_mlp_kernel,
        out_shape=jax.ShapeDtypeStruct((B, n_actions), jnp.float32),
        grid=grid,
        in_specs=[
            pl.BlockSpec((bm, F), lambda i: (i, 0)),             # x: streamed over batch
            pl.BlockSpec(w1.shape, lambda i: (0, 0)),            # weights: VMEM-resident
            pl.BlockSpec(w_pack.shape, lambda i: (0, 0, 0)),
            pl.BlockSpec(bias.shape, lambda i: (0, 0)),
        ],
        out_specs=pl.BlockSpec((bm, n_actions), lambda i: (i, 0)),   # narrow Q store
        compiler_params=pltpu.CompilerParams(dimension_semantics=("parallel",)),
        cost_estimate=pl.CostEstimate(flops=flops, transcendentals=0,
                                      bytes_accessed=bytes_accessed),
    )(numerical_input, w1, w_pack, bias)


def init_params(key, numerical_input_size=6, n_actions=4, hidden=HIDDEN):
    """Deterministic synthetic init (PyTorch layout: weight [out, in], bias [out])."""
    keys = jax.random.split(key, 8)

    def lin(kw, kb, fan_in, fan_out):
        bound = 1.0 / jnp.sqrt(fan_in)
        w = jax.random.uniform(kw, (fan_out, fan_in), jnp.float32, -bound, bound)
        b = jax.random.uniform(kb, (fan_out,), jnp.float32, -bound, bound)
        return w, b

    p = {}
    p["num_fc1_w"], p["num_fc1_b"] = lin(keys[0], keys[1], numerical_input_size, hidden)
    p["num_fc2_w"], p["num_fc2_b"] = lin(keys[2], keys[3], hidden, hidden)
    p["fc1_w"], p["fc1_b"] = lin(keys[4], keys[5], hidden, hidden)  # total_input_size = 64
    p["fc2_w"], p["fc2_b"] = lin(keys[6], keys[7], hidden, n_actions)
    return p


def dqn_forward_ref(numerical_input, params):
    """Pure-JAX reference for correctness checking."""
    h = jnp.maximum(numerical_input @ params["num_fc1_w"].T + params["num_fc1_b"], 0.0)
    h = jnp.maximum(h @ params["num_fc2_w"].T + params["num_fc2_b"], 0.0)
    h = jnp.maximum(h @ params["fc1_w"].T + params["fc1_b"], 0.0)
    return h @ params["fc2_w"].T + params["fc2_b"]


if __name__ == "__main__":
    key = jax.random.PRNGKey(0)
    k_params, k_x = jax.random.split(key)

    batch = 8
    numerical_input_size = 6
    n_actions = 4

    params = init_params(k_params, numerical_input_size, n_actions)
    x = jax.random.normal(k_x, (batch, numerical_input_size), jnp.float32)
    q_ref = dqn_forward_ref(x, params)

    # f32 MXU-operand path (matches reference tightly).
    prep_f32 = prepare_params(params, compute_dtype=jnp.float32)
    q_f32 = jax.block_until_ready(dqn_forward(x, prep_f32))
    assert q_f32.shape == (batch, n_actions)
    assert jnp.allclose(q_f32, q_ref, atol=1e-5, rtol=1e-5), "f32 mismatch vs JAX reference"

    # bf16 MXU-operand / f32-accumulate path (recommended default on v5e/v6e/v7x).
    prep_bf16 = prepare_params(params)   # compute_dtype=jnp.bfloat16
    q_bf16 = jax.block_until_ready(dqn_forward(x, prep_bf16))
    assert q_bf16.shape == (batch, n_actions)
    assert jnp.allclose(q_bf16, q_ref, atol=3e-2, rtol=3e-2), "bf16 mismatch vs JAX reference"

    # Multi-block batch grid with a RAGGED last block (B=50, bm=16 -> blocks of
    # 16/16/16/2), exercising tail masking plus the parallel batch grid.
    big_b = 50
    x_big = jax.random.normal(jax.random.PRNGKey(1), (big_b, numerical_input_size), jnp.float32)
    q_big = jax.block_until_ready(dqn_forward(x_big, prep_f32, block_batch=16))
    assert q_big.shape == (big_b, n_actions)
    assert jnp.allclose(q_big, dqn_forward_ref(x_big, params), atol=1e-5, rtol=1e-5), \
        "ragged batched-grid mismatch vs JAX reference"

    print("KERNEL_OK")
</pallas_src>

<mosaic_0001>
module attributes {stable_mosaic.version = 11 : i64} {
  func.func @_dqn_mlp_kernel(%arg0: i32, %arg1: memref<8x6xf32, #tpu.memory_space<vmem>>, %arg2: memref<6x64xf32, #tpu.memory_space<vmem>>, %arg3: memref<3x64x64xf32, #tpu.memory_space<vmem>>, %arg4: memref<4x64xf32, #tpu.memory_space<vmem>>, %arg5: memref<8x4xf32, #tpu.memory_space<vmem>>) attributes {dimension_semantics = [#tpu.dimension_semantics<parallel>], iteration_bounds = array<i64: 1>, scalar_prefetch = 0 : i64, scratch_operands = 0 : i64, tpu.core_type = #tpu.core_type<tc>, window_params = [{transform_indices = @transform_0, window_bounds = array<i64: 8, 6>}, {pipeline_mode = #tpu.pipeline_mode<synchronous>, transform_indices = @transform_1, window_bounds = array<i64: 6, 64>}, {pipeline_mode = #tpu.pipeline_mode<synchronous>, transform_indices = @transform_2, window_bounds = array<i64: 3, 64, 64>}, {pipeline_mode = #tpu.pipeline_mode<synchronous>, transform_indices = @transform_3, window_bounds = array<i64: 4, 64>}, {transform_indices = @transform_4, window_bounds = array<i64: 8, 4>}]} {
    %c0 = arith.constant 0 : index
    %c0_0 = arith.constant 0 : index
    %0 = vector.load %arg1[%c0, %c0_0] : memref<8x6xf32, #tpu.memory_space<vmem>>, vector<8x6xf32>
    %c0_1 = arith.constant 0 : index
    %c0_2 = arith.constant 0 : index
    %1 = vector.load %arg2[%c0_1, %c0_2] : memref<6x64xf32, #tpu.memory_space<vmem>>, vector<6x64xf32>
    %cst = arith.constant dense<0.000000e+00> : vector<8x64xf32>
    %2 = tpu.matmul %0, %1, %cst {dimension_numbers = #tpu.dot_dimension_numbers<[1], [0], [0], [1], [0, 0, 1, 1], [], []>} : vector<8x6xf32>, vector<6x64xf32>, vector<8x64xf32> -> vector<8x64xf32>
    %c0_3 = arith.constant 0 : index
    %c0_4 = arith.constant 0 : index
    %3 = vector.load %arg4[%c0_3, %c0_4] : memref<4x64xf32, #tpu.memory_space<vmem>>, vector<1x64xf32>
    %4 = vector.broadcast %3 : vector<1x64xf32> to vector<8x64xf32>
    %5 = arith.addf %2, %4 : vector<8x64xf32>
    %cst_5 = arith.constant 0.000000e+00 : f32
    %6 = vector.broadcast %cst_5 : f32 to vector<8x64xf32>
    %7 = arith.maximumf %5, %6 : vector<8x64xf32>
    %c0_6 = arith.constant 0 : index
    %c0_7 = arith.constant 0 : index
    %c0_8 = arith.constant 0 : index
    %8 = vector.load %arg3[%c0_6, %c0_7, %c0_8] : memref<3x64x64xf32, #tpu.memory_space<vmem>>, vector<1x64x64xf32>
    %9 = vector.shape_cast %8 : vector<1x64x64xf32> to vector<64x64xf32>
    %cst_9 = arith.constant dense<0.000000e+00> : vector<8x64xf32>
    %10 = tpu.matmul %7, %9, %cst_9 {dimension_numbers = #tpu.dot_dimension_numbers<[1], [0], [0], [1], [0, 0, 1, 1], [], []>} : vector<8x64xf32>, vector<64x64xf32>, vector<8x64xf32> -> vector<8x64xf32>
    %c1 = arith.constant 1 : index
    %c0_10 = arith.constant 0 : index
    %11 = vector.load %arg4[%c1, %c0_10] : memref<4x64xf32, #tpu.memory_space<vmem>>, vector<1x64xf32>
    %12 = vector.broadcast %11 : vector<1x64xf32> to vector<8x64xf32>
    %13 = arith.addf %10, %12 : vector<8x64xf32>
    %cst_11 = arith.constant 0.000000e+00 : f32
    %14 = vector.broadcast %cst_11 : f32 to vector<8x64xf32>
    %15 = arith.maximumf %13, %14 : vector<8x64xf32>
    %c1_12 = arith.constant 1 : index
    %c0_13 = arith.constant 0 : index
    %c0_14 = arith.constant 0 : index
    %16 = vector.load %arg3[%c1_12, %c0_13, %c0_14] : memref<3x64x64xf32, #tpu.memory_space<vmem>>, vector<1x64x64xf32>
    %17 = vector.shape_cast %16 : vector<1x64x64xf32> to vector<64x64xf32>
    %cst_15 = arith.constant dense<0.000000e+00> : vector<8x64xf32>
    %18 = tpu.matmul %15, %17, %cst_15 {dimension_numbers = #tpu.dot_dimension_numbers<[1], [0], [0], [1], [0, 0, 1, 1], [], []>} : vector<8x64xf32>, vector<64x64xf32>, vector<8x64xf32> -> vector<8x64xf32>
    %c2 = arith.constant 2 : index
    %c0_16 = arith.constant 0 : index
    %19 = vector.load %arg4[%c2, %c0_16] : memref<4x64xf32, #tpu.memory_space<vmem>>, vector<1x64xf32>
    %20 = vector.broadcast %19 : vector<1x64xf32> to vector<8x64xf32>
    %21 = arith.addf %18, %20 : vector<8x64xf32>
    %cst_17 = arith.constant 0.000000e+00 : f32
    %22 = vector.broadcast %cst_17 : f32 to vector<8x64xf32>
    %23 = arith.maximumf %21, %22 : vector<8x64xf32>
    %c2_18 = arith.constant 2 : index
    %c0_19 = arith.constant 0 : index
    %c0_20 = arith.constant 0 : index
    %24 = vector.load %arg3[%c2_18, %c0_19, %c0_20] : memref<3x64x64xf32, #tpu.memory_space<vmem>>, vector<1x64x64xf32>
    %25 = vector.shape_cast %24 : vector<1x64x64xf32> to vector<64x64xf32>
    %cst_21 = arith.constant dense<0.000000e+00> : vector<8x64xf32>
    %26 = tpu.matmul %23, %25, %cst_21 {dimension_numbers = #tpu.dot_dimension_numbers<[1], [0], [0], [1], [0, 0, 1, 1], [], []>} : vector<8x64xf32>, vector<64x64xf32>, vector<8x64xf32> -> vector<8x64xf32>
    %27 = vector.extract_strided_slice %26 {offsets = [0, 0], sizes = [8, 4], strides = [1, 1]} : vector<8x64xf32> to vector<8x4xf32>
    %c3 = arith.constant 3 : index
    %c0_22 = arith.constant 0 : index
    %28 = vector.load %arg4[%c3, %c0_22] : memref<4x64xf32, #tpu.memory_space<vmem>>, vector<1x4xf32>
    %29 = vector.broadcast %28 : vector<1x4xf32> to vector<8x4xf32>
    %30 = arith.addf %27, %29 : vector<8x4xf32>
    %c0_23 = arith.constant 0 : index
    %c0_24 = arith.constant 0 : index
    %31 = vector.load %arg5[%c0_23, %c0_24] : memref<8x4xf32, #tpu.memory_space<vmem>>, vector<8x4xf32>
    tpu.vector_store %arg5[%c0_23, %c0_24], %30 {strides = array<i32>} : memref<8x4xf32, #tpu.memory_space<vmem>>, vector<8x4xf32>,
    return
  }
  func.func @transform_0(%arg0: i32) -> (i32, i32) {
    %c0_i32 = arith.constant 0 : i32
    %c0_i32_0 = arith.constant 0 : i32
    return %arg0, %c0_i32 : i32, i32
  }
  func.func @transform_1(%arg0: i32) -> (i32, i32) {
    %c0_i32 = arith.constant 0 : i32
    %c0_i32_0 = arith.constant 0 : i32
    %c0_i32_1 = arith.constant 0 : i32
    return %c0_i32, %c0_i32_0 : i32, i32
  }
  func.func @transform_2(%arg0: i32) -> (i32, i32, i32) {
    %c0_i32 = arith.constant 0 : i32
    %c0_i32_0 = arith.constant 0 : i32
    %c0_i32_1 = arith.constant 0 : i32
    %c0_i32_2 = arith.constant 0 : i32
    return %c0_i32, %c0_i32_0, %c0_i32_1 : i32, i32, i32
  }
  func.func @transform_3(%arg0: i32) -> (i32, i32) {
    %c0_i32 = arith.constant 0 : i32
    %c0_i32_0 = arith.constant 0 : i32
    %c0_i32_1 = arith.constant 0 : i32
    return %c0_i32, %c0_i32_0 : i32, i32
  }
  func.func @transform_4(%arg0: i32) -> (i32, i32) {
    %c0_i32 = arith.constant 0 : i32
    %c0_i32_0 = arith.constant 0 : i32
    return %arg0, %c0_i32 : i32, i32
  }
}

</mosaic_0001>

<bundles_post_ra>
// kernel: tpu_custom_call.1
= control target key start
LH: loop header
LB: loop body
LE: loop exit
PB: predicated region body
PF: predicated region fallthrough
CT: control target
= control target key end

     0   :  { %9 = vsyncpa [#allocation3], 0  ;;  %s729_s0 = inlined_call_operand.hbm [shape: f32[8,6], index: 0, kind: input, shape index: {}]   ;;  %s730_s1 = inlined_call_operand.hbm [shape: f32[6,64], index: 1, kind: input, shape index: {}]   ;;  %s731_s2 = inlined_call_operand.hbm [shape: f32[3,64,64], index: 2, kind: input, shape index: {}]   ;;  %s732_s3 = inlined_call_operand.vmem [shape: f32[4,64], index: 3, kind: input, shape index: {}]   ;;  %s733_s4 = inlined_call_operand.vmem [shape: f32[8,4], index: 4, kind: output, shape index: {}]  }
   0x1   :  { %10 = vsyncpa [#allocation5], 0  ;;  %s626_s15 = smov [#allocation4]   ;;  %s627_s17 = smov [#allocation2]  }
   0x2   :  { %s27_s16 = sshll.u32 %s626_s15, 4  ;;  %s17_s18 = sshll.u32 %s627_s17, 4  ;;  %s28_s16 = int_to_ptr.vmem [resolvable:$true] %s27_s16  ;;  %s18_s18 = int_to_ptr.vmem [resolvable:$true] %s17_s18 }
   0x3   :  { %s556_s21 = scalar_lea.hbm %s730_s1, 128 }
   0x4   :  { %p557_p0 = scmp.ne.s32.totalorder %s730_s1, %s556_s21  ;;  %p560_p1 = scmp.lt.u32.totalorder %s556_s21, %s730_s1 }
   0x6   :  { %p562_p2 = pnand %p560_p1, %p557_p0 }
   0x8   :  { %565 = shalt.err (!%p562_p2)
}
   0x9   :  { %s566_s26 = scalar_lea.vmem %s28_s16, 128  ;;  %p571_p4 = scmp.lt.s32.totalorder %s28_s16, %s28_s16 }
   0xa   :  { %p567_p3 = scmp.ne.s32.totalorder %s28_s16, %s566_s26  ;;  %p572_p5 = scmp.lt.s32.totalorder %s566_s26, %s566_s26 }
   0xc   :  { %p573_p6 = por %p572_p5, %p571_p4 }
   0xe   :  { %p574_p7 = pnand %p573_p6, %p567_p3 }
  0x10   :  { %577 = shalt.err (!%p574_p7)
}
  0x11   :  { %30 = dma.hbm_to_vmem [thread:$0]  %s730_s1, 128, %s28_s16, [#allocation5]  }
  0x12   :  { %s578_s5 = scalar_lea.hbm %s729_s0, 128 }
  0x13   :  { %p579_p8 = scmp.ne.s32.totalorder %s729_s0, %s578_s5  ;;  %p582_p9 = scmp.lt.u32.totalorder %s578_s5, %s729_s0 }
  0x15   :  { %p584_p10 = pnand %p582_p9, %p579_p8 }
  0x17   :  { %587 = shalt.err (!%p584_p10)
}
  0x18   :  { %s588_s10 = scalar_lea.vmem %s18_s18, 128  ;;  %p593_p12 = scmp.lt.s32.totalorder %s18_s18, %s18_s18 }
  0x19   :  { %p589_p11 = scmp.ne.s32.totalorder %s18_s18, %s588_s10  ;;  %p594_p13 = scmp.lt.s32.totalorder %s588_s10, %s588_s10 }
  0x1b   :  { %p595_p0 = por %p594_p13, %p593_p12 }
  0x1d   :  { %p596_p1 = pnand %p595_p0, %p589_p11 }
  0x1f   :  { %599 = shalt.err (!%p596_p1)
}
  0x20   :  { %20 = dma.hbm_to_vmem [thread:$0]  %s729_s0, 128, %s18_s18, [#allocation3]  }
  0x21   :  { %s628_s12 = smov [#allocation6]   ;;  %s600_s16 = scalar_lea.hbm %s731_s2, 3072 }
  0x22   :  { %s36_s13 = sshll.u32 %s628_s12, 4  ;;  %p601_p2 = scmp.ne.s32.totalorder %s731_s2, %s600_s16  ;;  %s37_s13 = int_to_ptr.vmem [resolvable:$true] %s36_s13 }
  0x23   :  { %p604_p3 = scmp.lt.u32.totalorder %s600_s16, %s731_s2 }
  0x25   :  { %p606_p4 = pnand %p604_p3, %p601_p2 }
  0x27   :  { %609 = shalt.err (!%p606_p4)
}
  0x28   :  { %s610_s22 = scalar_lea.vmem %s37_s13, 3072  ;;  %p615_p6 = scmp.lt.s32.totalorder %s37_s13, %s37_s13 }
  0x29   :  { %p611_p5 = scmp.ne.s32.totalorder %s37_s13, %s610_s22  ;;  %p616_p7 = scmp.lt.s32.totalorder %s610_s22, %s610_s22 }
  0x2b   :  { %p617_p8 = por %p616_p7, %p615_p6 }
  0x2d   :  { %p618_p9 = pnand %p617_p8, %p611_p5 }
  0x2f   :  { %621 = shalt.err (!%p618_p9)
}
  0x30   :  { %s629_s0 = smov 128   ;;  %s630_s18 = smov 8  }
  0x31   :  { %42 = dma.hbm_to_vmem [thread:$0]  %s731_s2, 3072, %s37_s13, [#allocation5], %s629_s0, %s629_s0, %s630_s18  }
  0x32   :  { %622 = dma.done.wait [#allocation3], 128  }
  0x33   :  { %623 = vsyncadd [#allocation3], 4294967168 }
  0x34   :  { %624 = dma.done.wait [#allocation5], 3200  }
  0x35   :  { %625 = vsyncadd [#allocation5], 4294964096  ;;  %v631_v0 = vmov 0.0   ;;  %vm632_vm0 = vmmov 0   ;;  %v633_v1 = vmov 0.0|0.0   ;;  %vm65_vm1 = vcmask 1045504  }
  0x36   :  { %450 = vmatprep.subr.mxu0 %v631_v0  ;;  %452 = vmatprep.mubr.msk.f32.mxu0 %vm632_vm0, %v631_v0  ;;  %vm61_vm2 = vcmask 48128   ;;  %v55_v2 = vld [vmem:[#allocation4] sm:$0x3f]  ;;  %v54_v3 = vld [vmem:[#allocation2] sm:$0xff]  ;;  %v140_v4 = vld [vmem:[#allocation6] sm:$0xff]  ;;  %vm153_vm3 = vcmask 523264  }
  0x37   :  { %512 = vmatprep.subr.bf16.mxu1 %v633_v1  ;;  %471 = vmatprep.mubr.msk.f32.mxu1 %vm632_vm0, %v631_v0  ;;  %v141_v5 = vld [vmem:[#allocation6 + $0x8] sm:$0xff]  ;;  %v142_v6 = vld [vmem:[#allocation6 + $0x10] sm:$0xff]  ;;  %v143_v7 = vld [vmem:[#allocation6 + $0x18] sm:$0xff]  ;;  %vm404_vm4 = vcmask 31744  }
  0x38   :  { %451 = vmatpush3.msk.msra.mxu0 %vm65_vm1, %v55_v2  ;;  %v513_v8 = vpack.c.bf16 %v141_v5, %v140_v4  ;;  %v516_v9 = vpack.c.bf16 %v143_v7, %v142_v6  ;;  %v144_v10 = vld [vmem:[#allocation6 + $0x20] sm:$0xff]  ;;  %v145_v11 = vld [vmem:[#allocation6 + $0x28] sm:$0xff]  ;;  %v146_v13 = vld [vmem:[#allocation6 + $0x30] sm:$0xff] }
  0x39   :  { %453 = vmatmul.mubr.msk.f32.vlgmr.msra.gmra.mrb[0].mxu0 %vm61_vm2, %v54_v3  ;;  %524 = vmatprep.subr.bf16.mxu0 %v633_v1  ;;  %v519_v12 = vpack.c.bf16 %v145_v11, %v144_v10  ;;  %v147_v14 = vld [vmem:[#allocation6 + $0x38] sm:$0xff]  ;;  %v229_v16 = vld [vmem:[#allocation6 + $0x40] sm:$0xff]  ;;  %v230_v17 = vld [vmem:[#allocation6 + $0x48] sm:$0xff] }
  0x3a   :  { %490 = vmatprep.mubr.msk.f32.mxu0 %vm632_vm0, %v631_v0  ;;  %514 = vmatpush3.bf16.msra.mxu1 %v513_v8  ;;  %v522_v15 = vpack.c.bf16 %v147_v14, %v146_v13  ;;  %v231_v18 = vld [vmem:[#allocation6 + $0x50] sm:$0xff]  ;;  %v525_v19 = vpack.c.bf16 %v230_v17, %v229_v16  ;;  %v232_v20 = vld [vmem:[#allocation6 + $0x58] sm:$0xff]  ;;  %v233_v22 = vld [vmem:[#allocation6 + $0x60] sm:$0xff] }
  0x3b   :  { %515 = vmatprep.subr.bf16.mxu1 %v633_v1  ;;  %v528_v21 = vpack.c.bf16 %v232_v20, %v231_v18  ;;  %v234_v23 = vld [vmem:[#allocation6 + $0x68] sm:$0xff]  ;;  %v235_v30 = vld [vmem:[#allocation6 + $0x70] sm:$0xff]  ;;  %v236_v31 = vld [vmem:[#allocation6 + $0x78] sm:$0xff] }
  0x3c   :  { %526 = vmatpush3.bf16.msra.mxu0 %v525_v19  ;;  %v531_v24 = vpack.c.bf16 %v234_v23, %v233_v22  ;;  %v412_v25 = vld [vmem:[%s732_s3] ss:$0 sm:$0xff]  ;;  %v534_v32 = vpack.c.bf16 %v236_v31, %v235_v30  ;;  %v317_v33 = vld [vmem:[#allocation6 + $0x80] sm:$0xff]  ;;  %v319_v35 = vld [vmem:[#allocation6 + $0x90] sm:$0xff] }
  0x3d   :  { %527 = vmatprep.subr.bf16.mxu0 %v633_v1  ;;  %v318_v34 = vld [vmem:[#allocation6 + $0x88] sm:$0xff]  ;;  %v320_v37 = vld [vmem:[#allocation6 + $0x98] sm:$0xff]  ;;  %v321_v39 = vld [vmem:[#allocation6 + $0xa0] sm:$0xff] }
  0x3e   :  { %517 = vmatpush3.bf16.msra.mxu1 %v516_v9  ;;  %v537_v36 = vpack.c.bf16 %v318_v34, %v317_v33  ;;  %v540_v38 = vpack.c.bf16 %v320_v37, %v319_v35  ;;  %v322_v40 = vld [vmem:[#allocation6 + $0xa8] sm:$0xff]  ;;  %v323_v47 = vld [vmem:[#allocation6 + $0xb0] sm:$0xff]  ;;  %v324_v48 = vld [vmem:[#allocation6 + $0xb8] sm:$0xff] }
  0x3f   :  { %518 = vmatprep.subr.bf16.mxu1 %v633_v1  ;;  %v543_v41 = vpack.c.bf16 %v322_v40, %v321_v39  ;;  %v415_v42 = vld [vmem:[%s732_s3 + $0x1] ss:$0 sm:$0xff]  ;;  %v546_v49 = vpack.c.bf16 %v324_v48, %v323_v47  ;;  %v417_v50 = vld [vmem:[%s732_s3 + $0x2] ss:$0 sm:$0xff]  ;;  %v420_v55 = vld [vmem:[%s732_s3 + $0x3] ss:$0 sm:$0xff] }
  0x40   :  { %529 = vmatpush3.bf16.msra.mxu0 %v528_v21 }
  0x41   :  { %530 = vmatprep.subr.bf16.mxu0 %v633_v1 }
  0x42   :  { %520 = vmatpush3.bf16.msra.mxu1 %v519_v12 }
  0x43   :  { %521 = vmatprep.subr.bf16.mxu1 %v633_v1 }
  0x44   :  { %532 = vmatpush3.bf16.msra.mxu0 %v531_v24 }
  0x45   :  { %533 = vmatprep.subr.bf16.mxu0 %v633_v1 }
  0x46   :  { %523 = vmatpush3.bf16.msra.mxu1 %v522_v15 }
  0x47   :  { %536 = vmatprep.subr.bf16.mxu1 %v633_v1 }
  0x48   :  { %535 = vmatpush3.bf16.msra.mxu0 %v534_v32 }
 0x10c   :  { %v135_v26 = vpop.f32.mrb[0].mxu0 }
 0x10d   :  { %v136_v27 = vadd.f32 %v412_v25, %v135_v26  ;;  %v454_v28 = vpop.f32.mrb[1].mxu0 }
 0x10f   :  { %v139_v29 = vmax.f32 %v136_v27, 0.0 }
 0x111   :  { %472 = vmatmul.mubr.msk.f32.vlgmr.msra.gmra.mrb[0].mxu1 %vm153_vm3, %v139_v29 }
 0x112   :  { %509 = vmatprep.mubr.msk.f32.mxu1 %vm632_vm0, %v631_v0  ;;  %538 = vmatpush3.bf16.msra.mxu1 %v537_v36 }
 0x113   :  { %539 = vmatprep.subr.bf16.mxu1 %v633_v1 }
 0x116   :  { %541 = vmatpush3.bf16.msra.mxu1 %v540_v38 }
 0x117   :  { %542 = vmatprep.subr.bf16.mxu1 %v633_v1 }
 0x11a   :  { %544 = vmatpush3.bf16.msra.mxu1 %v543_v41 }
 0x11b   :  { %545 = vmatprep.subr.bf16.mxu1 %v633_v1 }
 0x11e   :  { %547 = vmatpush3.bf16.msra.mxu1 %v546_v49 }
 0x1e4   :  { %v223_v43 = vpop.f32.mrb[0].mxu1 }
 0x1e5   :  { %v224_v44 = vadd.f32 %v415_v42, %v223_v43  ;;  %v473_v45 = vpop.f32.mrb[1].mxu1 }
 0x1e7   :  { %v227_v46 = vmax.f32 %v224_v44, 0.0 }
 0x1e9   :  { %491 = vmatmul.mubr.msk.f32.vlgmr.msra.gmra.mrb[2].mxu0 %vm153_vm3, %v227_v46 }
 0x2bc   :  { %v311_v51 = vpop.f32.mrb[2].mxu0 }
 0x2bd   :  { %v312_v52 = vadd.f32 %v417_v50, %v311_v51  ;;  %v492_v53 = vpop.f32.mrb[3].mxu0 }
 0x2bf   :  { %v315_v54 = vmax.f32 %v312_v52, 0.0 }
 0x2c1   :  { %510 = vmatmul.mubr.msk.f32.vlgmr.msra.gmra.mrb[2].mxu1 %vm153_vm3, %v315_v54 }
 0x394   :  { %v394_v56 = vpop.f32.mrb[2].mxu1 }
 0x395   :  { %v403_v57 = vadd.f32 %v420_v55, %v394_v56  ;;  %v511_v58 = vpop.f32.mrb[3].mxu1 }
 0x397   :  { %405 = vst.msk [vmem:[%s733_s4] sm:$0xff] %vm404_vm4, %v403_v57 }
 0x398   :  { %410 = vsyncpa [#allocation3], 1 }
 0x399   :  { %411 = vsyncpa [#allocation5], 1 }

</bundles_post_ra>
